<compile_context>
chip_gen: v7x
topology: tpu7x:2x2x1
jax: 0.10.0
libtpu: 0.0.40
codegen_flags: <defaults>
</compile_context>

<pallas_src>
import functools

import jax
import jax.numpy as jnp
from jax.experimental import pallas as pl
from jax.experimental.pallas import tpu as pltpu

EPS = 1e-5

_BUDGET_CACHE = []


def _cdiv(a, b):
    return -(-a // b)


def _round_up(a, b):
    return _cdiv(a, b) * b


def _vmem_budget():
    """(target_block_bytes, vmem_limit_bytes), generation-aware."""
    if _BUDGET_CACHE:
        return _BUDGET_CACHE[0]
    cap = None
    try:
        cap = getattr(pltpu.get_tpu_info(), "vmem_capacity_bytes", None)
    except Exception:
        cap = None
    if cap is None:
        cap = 64 * 1024 * 1024                      # conservative (v7x-sized)
    if cap >= 100 * 1024 * 1024:                    # v5e / v6e: 128 MiB VMEM
        budget = (8 * 1024 * 1024, 96 * 1024 * 1024)
    else:                                           # v7x: 64 MiB per TensorCore
        budget = (4 * 1024 * 1024, 48 * 1024 * 1024)
    _BUDGET_CACHE.append(budget)
    return budget


def _pick_fold(n, cl):
    """Row-fold factor k (k | n) so the folded lane width k*cl is large."""
    if cl >= 128 or n <= 1:
        return 1
    cap = max(1, 1024 // cl)
    best = 1
    for k in range(1, min(n, cap) + 1):
        if n % k == 0:
            best = k
    # TODO(synk): for awkward N (e.g. prime) with tiny C this stays at k=1
    # (narrow lanes); a pad-to-multiple path would restore lane density at the
    # cost of one extra HBM copy.
    return best


def _plan_tiles(mf, w, target_bytes):
    """Pick (mb, wb): row / lane block sizes for an f32-streamed (mf, w) slab."""
    target_elems = max(1, target_bytes // 4)
    if w <= target_elems // 8:
        wb = w                                       # full width in one block
        mb_des = max(8, ((target_elems // w) // 8) * 8)
        if mf <= 8:
            mb = mf
        else:
            mb = min(mb_des, max(8, (mf // 8) * 8))
    else:
        # A single 8-row slab would blow the budget: tile the lane axis too.
        mb = mf if mf < 8 else 8
        wb_des = max(128, ((target_elems // mb) // 128) * 128)
        wb = min(wb_des, _round_up(w, 128))
        if wb >= w:
            wb = w
    return mb, wb


# --------------------------------- kernels -----------------------------------

def _stats_kernel(x_ref, mean_ref, m2_ref, *, mf, mb, tiles_per_core):
    """Per-column (mean, M2) over the row axis of a (Mf, W) slab.

    Grid: (splits, col_blocks, row_tiles_per_core).  mean_ref / m2_ref are
    (1, 1, wb) resident f32 accumulators (constant index map over the row axis),
    one row per core-split.  Single sweep per tile (sum / sum-of-squares),
    Chan merge across tiles; the ragged / phantom tail tiles are handled with a
    dynamic valid-row count + masked select (never divisor-dependent).
    """
    core = pl.program_id(0)
    i = pl.program_id(2)

    @pl.when(i == 0)
    def _init():
        mean_ref[...] = jnp.zeros_like(mean_ref)
        m2_ref[...] = jnp.zeros_like(m2_ref)

    gb = core * tiles_per_core + i                   # unclamped global row block
    rem = mf - gb * mb                               # valid rows in this block
    cnt = jnp.clip(rem, 0, mb).astype(jnp.float32)
    prev = jnp.clip(mf - core * tiles_per_core * mb, 0, i * mb).astype(jnp.float32)

    x = x_ref[...].astype(jnp.float32)               # (mb, wb)
    rows = jax.lax.broadcasted_iota(jnp.int32, x.shape, 0)
    xm = jnp.where(rows < rem, x, 0.0)               # select (NaN-safe), not mul

    s = jnp.sum(xm, axis=0)[None, None, :]           # (1, 1, wb)
    ss = jnp.sum(xm * xm, axis=0)[None, None, :]
    cnt_safe = jnp.maximum(cnt, 1.0)
    tile_mean = s * (1.0 / cnt_safe)
    tile_m2 = ss - tile_mean * s                     # = ss - cnt * mean^2

    # Chan's streaming merge with the resident accumulator.
    new_cnt = jnp.maximum(prev + cnt, 1.0)
    frac = cnt / new_cnt
    delta = tile_mean - mean_ref[...]
    mean_ref[...] = mean_ref[...] + delta * frac
    m2_ref[...] = m2_ref[...] + tile_m2 + (delta * delta) * (prev * frac)


def _norm_kernel(x_ref, scale_ref, shift_ref, o_ref):
    """y = x * scale[col] + shift[col] on an (mb, wb) tile (lane-dense stores)."""
    x = x_ref[...].astype(jnp.float32)
    o_ref[...] = (x * scale_ref[...] + shift_ref[...]).astype(o_ref.dtype)


# --------------------------------- wrapper ------------------------------------

def _bn_folded(x, gamma, beta, eps, n, c, l, target_block_bytes=None):
    target_default, vmem_limit = _vmem_budget()
    target = target_block_bytes or target_default

    cl = c * l
    k = _pick_fold(n, cl)                            # free row-major fold
    mf, w = n // k, k * cl
    xf = x.reshape(mf, w)

    mb, wb = _plan_tiles(mf, w, target)
    t_rows = _cdiv(mf, mb)
    t_cols = _cdiv(w, wb)
    splits = 2 if t_rows >= 2 else 1                 # dual-TC stats on v7x
    tpc = _cdiv(t_rows, splits)                      # row tiles per core-split

    # ----------------------------- pass 1: stats ------------------------------
    stats_kern = functools.partial(_stats_kernel, mf=mf, mb=mb, tiles_per_core=tpc)

    def x_stats_map(core, j, i):
        # Clamp phantom tail blocks into range; their contribution is masked
        # to zero inside the kernel via the unclamped row count.
        return (jnp.minimum(core * tpc + i, t_rows - 1), j)

    acc_spec = pl.BlockSpec((1, 1, wb), lambda core, j, i: (core, 0, j))

    mean_p, m2_p = pl.pallas_call(
        stats_kern,
        grid=(splits, t_cols, tpc),
        in_specs=[pl.BlockSpec((mb, wb), x_stats_map)],
        out_specs=(acc_spec, acc_spec),
        out_shape=(
            jax.ShapeDtypeStruct((splits, 1, w), jnp.float32),
            jax.ShapeDtypeStruct((splits, 1, w), jnp.float32),
        ),
        compiler_params=pltpu.CompilerParams(
            dimension_semantics=("parallel", "arbitrary", "arbitrary"),
            vmem_limit_bytes=vmem_limit,
        ),
    )(xf)

    mean_p = mean_p[:, 0, :]
    m2_p = m2_p[:, 0, :]

    # Merge the (up to 2) core partials — counts are static Python numbers.
    if splits == 1:
        mean_w, m2_w = mean_p[0], m2_p[0]
    else:
        n0 = float(tpc * mb)                         # core 0: all tiles full
        n1 = float(mf - tpc * mb)                    # core 1: the rest (> 0)
        nt = n0 + n1
        d = mean_p[1] - mean_p[0]
        mean_w = mean_p[0] + d * (n1 / nt)
        m2_w = m2_p[0] + m2_p[1] + d * d * (n0 * n1 / nt)

    # Merge the k*L folded column groups per channel (equal counts = Mf each).
    mean_g = mean_w.reshape(k, c, l)
    m2_g = m2_w.reshape(k, c, l)
    mean_c = jnp.mean(mean_g, axis=(0, 2))                               # (C,)
    m2_c = (jnp.sum(m2_g, axis=(0, 2))
            + float(mf) * jnp.sum((mean_g - mean_c[None, :, None]) ** 2, axis=(0, 2)))
    var_c = jnp.maximum(m2_c / float(n * l), 0.0)                        # biased

    inv = jax.lax.rsqrt(var_c + eps)
    scale_c = gamma.reshape(c).astype(jnp.float32) * inv
    shift_c = beta.reshape(c).astype(jnp.float32) - mean_c * scale_c
    # Pre-expand to folded lane width (tiny; DMA'd once per column block).
    scale_w = jnp.broadcast_to(scale_c[None, :, None], (k, c, l)).reshape(1, w)
    shift_w = jnp.broadcast_to(shift_c[None, :, None], (k, c, l)).reshape(1, w)

    # --------------------------- pass 2: normalize -----------------------------
    out_f = pl.pallas_call(
        _norm_kernel,
        grid=(t_rows, t_cols),
        in_specs=[
            pl.BlockSpec((mb, wb), lambda i, j: (i, j)),
            pl.BlockSpec((1, wb), lambda i, j: (0, j)),
            pl.BlockSpec((1, wb), lambda i, j: (0, j)),
        ],
        out_specs=pl.BlockSpec((mb, wb), lambda i, j: (i, j)),
        out_shape=jax.ShapeDtypeStruct((mf, w), x.dtype),
        compiler_params=pltpu.CompilerParams(
            dimension_semantics=("parallel", "parallel"),
            vmem_limit_bytes=vmem_limit,
        ),
    )(xf, scale_w, shift_w)

    return out_f.reshape(x.shape)


def batch_norm_1d(x, gamma, beta, eps=EPS, target_block_bytes=None):
    """Training-mode torch.nn.BatchNorm1d forward. x: (N, C) or (N, C, L)."""
    # TODO(synk): running_mean / running_var buffer updates (torch module
    # state) are not produced; only the normalized forward output is returned.
    if x.ndim == 2:
        n, c = x.shape
        l = 1
    elif x.ndim == 3:
        n, c, l = x.shape
    else:
        raise ValueError("BatchNorm1d expects 2D or 3D input")
    return _bn_folded(x, gamma, beta, eps, n, c, l, target_block_bytes)


# ----------------------------------- demo -------------------------------------

def _ref_bn(x, gamma, beta, eps):
    if x.ndim == 3:
        axes, gshape = (0, 2), (1, -1, 1)
    else:
        axes, gshape = (0,), (1, -1)
    mean = jnp.mean(x, axis=axes, keepdims=True)
    var = jnp.mean((x - mean) ** 2, axis=axes, keepdims=True)
    return (x - mean) * jax.lax.rsqrt(var + eps) * gamma.reshape(gshape) + beta.reshape(gshape)


if __name__ == "__main__":
    key = jax.random.PRNGKey(0)
    k3, k2, kbig, kg, kb = jax.random.split(key, 5)

    # --- 3-D input (N, C, L): small L -> folded lane-dense path ----------------
    N, C, L = 2, 4, 16
    x3 = jax.random.normal(k3, (N, C, L), dtype=jnp.float32)
    gamma3 = jnp.ones((C,), dtype=jnp.float32)   # torch default init
    beta3 = jnp.zeros((C,), dtype=jnp.float32)
    out3 = jax.block_until_ready(batch_norm_1d(x3, gamma3, beta3))
    assert out3.shape == x3.shape
    assert float(jnp.max(jnp.abs(out3 - _ref_bn(x3, gamma3, beta3, EPS)))) < 1e-4

    # --- 2-D input (N, C): lane-folded path with a non-trivial affine ----------
    N2, C2 = 16, 8
    x2 = jax.random.normal(k2, (N2, C2), dtype=jnp.float32)
    gamma2 = jax.random.normal(kg, (C2,), dtype=jnp.float32)
    beta2 = jax.random.normal(kb, (C2,), dtype=jnp.float32)
    out2 = jax.block_until_ready(batch_norm_1d(x2, gamma2, beta2))
    assert out2.shape == x2.shape
    assert float(jnp.max(jnp.abs(out2 - _ref_bn(x2, gamma2, beta2, EPS)))) < 1e-4

    # --- 3-D input with a forced tiny block budget: exercises the cdiv grid,
    #     masked ragged tail tile, and the dual core-split stats merge ----------
    N3, C3, L3 = 50, 8, 24
    xb = jax.random.normal(kbig, (N3, C3, L3), dtype=jnp.float32)
    gammab = jax.random.normal(kg, (C3,), dtype=jnp.float32)
    betab = jax.random.normal(kb, (C3,), dtype=jnp.float32)
    outb = jax.block_until_ready(
        batch_norm_1d(xb, gammab, betab, target_block_bytes=8 * C3 * L3 * 4))
    assert outb.shape == xb.shape
    assert float(jnp.max(jnp.abs(outb - _ref_bn(xb, gammab, betab, EPS)))) < 1e-4

    print("KERNEL_OK")
</pallas_src>

<mosaic_0001>
module attributes {stable_mosaic.version = 11 : i64} {
  func.func @_stats_kernel(%arg0: i32, %arg1: i32, %arg2: i32, %arg3: memref<1x128xf32, #tpu.memory_space<vmem>>, %arg4: memref<1x1x128xf32, #tpu.memory_space<vmem>>, %arg5: memref<1x1x128xf32, #tpu.memory_space<vmem>>) attributes {dimension_semantics = [#tpu.dimension_semantics<parallel>, #tpu.dimension_semantics<arbitrary>, #tpu.dimension_semantics<arbitrary>], iteration_bounds = array<i64: 1, 1, 1>, scalar_prefetch = 0 : i64, scratch_operands = 0 : i64, tpu.core_type = #tpu.core_type<tc>, window_params = [{transform_indices = @transform_0, window_bounds = array<i64: 1, 128>}, {transform_indices = @transform_1, window_bounds = array<i64: 1, 1, 128>}, {transform_indices = @transform_2, window_bounds = array<i64: 1, 1, 128>}]} {
    %c0_i32 = arith.constant 0 : i32
    %0 = arith.cmpi eq, %arg2, %c0_i32 : i32
    %1 = arith.extui %0 : i1 to i32
    %c0_i32_0 = arith.constant 0 : i32
    %2 = arith.cmpi ne, %1, %c0_i32_0 : i32
    scf.if %2 {
      %cst_31 = arith.constant 0.000000e+00 : f32
      %52 = vector.broadcast %cst_31 : f32 to vector<1x1x128xf32>
      %c0_32 = arith.constant 0 : index
      %c0_33 = arith.constant 0 : index
      %c0_34 = arith.constant 0 : index
      %53 = vector.load %arg4[%c0_32, %c0_33, %c0_34] : memref<1x1x128xf32, #tpu.memory_space<vmem>>, vector<1x1x128xf32>
      tpu.vector_store %arg4[%c0_32, %c0_33, %c0_34], %52 {strides = array<i32>} : memref<1x1x128xf32, #tpu.memory_space<vmem>>, vector<1x1x128xf32>,
      %cst_35 = arith.constant 0.000000e+00 : f32
      %54 = vector.broadcast %cst_35 : f32 to vector<1x1x128xf32>
      %c0_36 = arith.constant 0 : index
      %c0_37 = arith.constant 0 : index
      %c0_38 = arith.constant 0 : index
      %55 = vector.load %arg5[%c0_36, %c0_37, %c0_38] : memref<1x1x128xf32, #tpu.memory_space<vmem>>, vector<1x1x128xf32>
      tpu.vector_store %arg5[%c0_36, %c0_37, %c0_38], %54 {strides = array<i32>} : memref<1x1x128xf32, #tpu.memory_space<vmem>>, vector<1x1x128xf32>,
    } else {
    }
    %c1_i32 = arith.constant 1 : i32
    %3 = arith.muli %arg0, %c1_i32 : i32
    %4 = arith.addi %3, %arg2 : i32
    %c1_i32_1 = arith.constant 1 : i32
    %5 = arith.muli %4, %c1_i32_1 : i32
    %c1_i32_2 = arith.constant 1 : i32
    %6 = arith.subi %c1_i32_2, %5 : i32
    %c0_i32_3 = arith.constant 0 : i32
    %c1_i32_4 = arith.constant 1 : i32
    %7 = arith.maxsi %c0_i32_3, %6 : i32
    %8 = arith.minsi %c1_i32_4, %7 : i32
    %9 = arith.sitofp %8 : i32 to f32
    %c1_i32_5 = arith.constant 1 : i32
    %10 = arith.muli %arg0, %c1_i32_5 : i32
    %c1_i32_6 = arith.constant 1 : i32
    %11 = arith.muli %10, %c1_i32_6 : i32
    %c1_i32_7 = arith.constant 1 : i32
    %12 = arith.subi %c1_i32_7, %11 : i32
    %c1_i32_8 = arith.constant 1 : i32
    %13 = arith.muli %arg2, %c1_i32_8 : i32
    %c0_i32_9 = arith.constant 0 : i32
    %14 = arith.maxsi %c0_i32_9, %12 : i32
    %15 = arith.minsi %13, %14 : i32
    %16 = arith.sitofp %15 : i32 to f32
    %c0 = arith.constant 0 : index
    %c0_10 = arith.constant 0 : index
    %17 = vector.load %arg3[%c0, %c0_10] : memref<1x128xf32, #tpu.memory_space<vmem>>, vector<1x128xf32>
    %18 = tpu.iota {dimensions = array<i32: 0>} : vector<1x128xi32>
    %19 = vector.broadcast %6 : i32 to vector<1x128xi32>
    %20 = arith.cmpi slt, %18, %19 : vector<1x128xi32>
    %cst = arith.constant 0.000000e+00 : f32
    %21 = vector.broadcast %cst : f32 to vector<1x128xf32>
    %22 = arith.select %20, %17, %21 : vector<1x128xi1>, vector<1x128xf32>
    %cst_11 = arith.constant dense<0.000000e+00> : vector<128xf32>
    %23 = vector.multi_reduction <add>, %22, %cst_11 [0] : vector<1x128xf32> to vector<128xf32>
    %24 = vector.shape_cast %23 : vector<128xf32> to vector<1x1x128xf32>
    %25 = arith.mulf %22, %22 : vector<1x128xf32>
    %cst_12 = arith.constant dense<0.000000e+00> : vector<128xf32>
    %26 = vector.multi_reduction <add>, %25, %cst_12 [0] : vector<1x128xf32> to vector<128xf32>
    %27 = vector.shape_cast %26 : vector<128xf32> to vector<1x1x128xf32>
    %cst_13 = arith.constant 1.000000e+00 : f32
    %28 = arith.maximumf %9, %cst_13 : f32
    %cst_14 = arith.constant 1.000000e+00 : f32
    %29 = arith.divf %cst_14, %28 : f32
    %30 = vector.broadcast %29 : f32 to vector<1x1x128xf32>
    %31 = arith.mulf %24, %30 : vector<1x1x128xf32>
    %32 = arith.mulf %31, %24 : vector<1x1x128xf32>
    %33 = arith.subf %27, %32 : vector<1x1x128xf32>
    %34 = arith.addf %16, %9 : f32
    %cst_15 = arith.constant 1.000000e+00 : f32
    %35 = arith.maximumf %34, %cst_15 : f32
    %36 = arith.divf %9, %35 : f32
    %c0_16 = arith.constant 0 : index
    %c0_17 = arith.constant 0 : index
    %c0_18 = arith.constant 0 : index
    %37 = vector.load %arg4[%c0_16, %c0_17, %c0_18] : memref<1x1x128xf32, #tpu.memory_space<vmem>>, vector<1x1x128xf32>
    %38 = arith.subf %31, %37 : vector<1x1x128xf32>
    %c0_19 = arith.constant 0 : index
    %c0_20 = arith.constant 0 : index
    %c0_21 = arith.constant 0 : index
    %39 = vector.load %arg4[%c0_19, %c0_20, %c0_21] : memref<1x1x128xf32, #tpu.memory_space<vmem>>, vector<1x1x128xf32>
    %40 = vector.broadcast %36 : f32 to vector<1x1x128xf32>
    %41 = arith.mulf %38, %40 : vector<1x1x128xf32>
    %42 = arith.addf %39, %41 : vector<1x1x128xf32>
    %c0_22 = arith.constant 0 : index
    %c0_23 = arith.constant 0 : index
    %c0_24 = arith.constant 0 : index
    %43 = vector.load %arg4[%c0_22, %c0_23, %c0_24] : memref<1x1x128xf32, #tpu.memory_space<vmem>>, vector<1x1x128xf32>
    tpu.vector_store %arg4[%c0_22, %c0_23, %c0_24], %42 {strides = array<i32>} : memref<1x1x128xf32, #tpu.memory_space<vmem>>, vector<1x1x128xf32>,
    %c0_25 = arith.constant 0 : index
    %c0_26 = arith.constant 0 : index
    %c0_27 = arith.constant 0 : index
    %44 = vector.load %arg5[%c0_25, %c0_26, %c0_27] : memref<1x1x128xf32, #tpu.memory_space<vmem>>, vector<1x1x128xf32>
    %45 = arith.addf %44, %33 : vector<1x1x128xf32>
    %46 = arith.mulf %38, %38 : vector<1x1x128xf32>
    %47 = arith.mulf %16, %36 : f32
    %48 = vector.broadcast %47 : f32 to vector<1x1x128xf32>
    %49 = arith.mulf %46, %48 : vector<1x1x128xf32>
    %50 = arith.addf %45, %49 : vector<1x1x128xf32>
    %c0_28 = arith.constant 0 : index
    %c0_29 = arith.constant 0 : index
    %c0_30 = arith.constant 0 : index
    %51 = vector.load %arg5[%c0_28, %c0_29, %c0_30] : memref<1x1x128xf32, #tpu.memory_space<vmem>>, vector<1x1x128xf32>
    tpu.vector_store %arg5[%c0_28, %c0_29, %c0_30], %50 {strides = array<i32>} : memref<1x1x128xf32, #tpu.memory_space<vmem>>, vector<1x1x128xf32>,
    return
  }
  func.func @transform_0(%arg0: i32, %arg1: i32, %arg2: i32) -> (i32, i32) {
    %c1_i32 = arith.constant 1 : i32
    %0 = arith.muli %arg0, %c1_i32 : i32
    %1 = arith.addi %0, %arg2 : i32
    %c0_i32 = arith.constant 0 : i32
    %2 = arith.minsi %1, %c0_i32 : i32
    %c0_i32_0 = arith.constant 0 : i32
    return %2, %arg1 : i32, i32
  }
  func.func @transform_1(%arg0: i32, %arg1: i32, %arg2: i32) -> (i32, i32, i32) {
    %c0_i32 = arith.constant 0 : i32
    %c0_i32_0 = arith.constant 0 : i32
    return %arg0, %c0_i32, %arg1 : i32, i32, i32
  }
  func.func @transform_2(%arg0: i32, %arg1: i32, %arg2: i32) -> (i32, i32, i32) {
    %c0_i32 = arith.constant 0 : i32
    %c0_i32_0 = arith.constant 0 : i32
    return %arg0, %c0_i32, %arg1 : i32, i32, i32
  }
}

</mosaic_0001>

<bundles_post_ra>
// kernel: tpu_custom_call.1
= control target key start
LH: loop header
LB: loop body
LE: loop exit
PB: predicated region body
PF: predicated region fallthrough
CT: control target
= control target key end

     0   :  { %8 = vsyncpa [#allocation3], 0  ;;  %s251_s0 = inlined_call_operand.hbm [shape: f32[1,128], index: 0, kind: input, shape index: {}]   ;;  %s252_s1 = inlined_call_operand.hbm [shape: f32[1,1,128], index: 1, kind: output, shape index: {0}]   ;;  %s253_s2 = inlined_call_operand.hbm [shape: f32[1,1,128], index: 2, kind: output, shape index: {1}]  }
   0x1   :  { %9 = vsyncpa [#allocation4], 0 }
   0x2   :  { %10 = vsyncpa [#allocation7], 0  ;;  %s196_s9 = smov [#allocation2]   ;;  %s124_s13 = scalar_lea.hbm %s251_s0, 16 }
   0x3   :  { %s22_s10 = sshll.u32 %s196_s9, 4  ;;  %p125_p0 = scmp.ne.s32.totalorder %s251_s0, %s124_s13  ;;  %s23_s10 = int_to_ptr.vmem [resolvable:$true] %s22_s10 }
   0x4   :  { %p128_p1 = scmp.lt.u32.totalorder %s124_s13, %s251_s0 }
   0x6   :  { %p130_p2 = pnand %p128_p1, %p125_p0 }
   0x8   :  { %133 = shalt.err (!%p130_p2)
}
   0x9   :  { %s134_s18 = scalar_lea.vmem %s23_s10, 16  ;;  %s138_s19 = scalar_lea.vmem %s23_s10, 32 }
   0xa   :  { %p135_p3 = scmp.ne.s32.totalorder %s23_s10, %s134_s18  ;;  %p139_p4 = scmp.lt.s32.totalorder %s23_s10, %s23_s10 }
   0xb   :  { %p140_p5 = scmp.lt.s32.totalorder %s138_s19, %s134_s18 }
   0xd   :  { %p141_p6 = por %p140_p5, %p139_p4 }
   0xf   :  { %p142_p7 = pnand %p141_p6, %p135_p3 }
  0x11   :  { %145 = shalt.err (!%p142_p7)
}
  0x12   :  { %25 = dma.hbm_to_vmem [thread:$0]  %s251_s0, 16, %s23_s10, [#allocation3]  }
  0x13   :  { %190 = dma.done.wait [#allocation3], 16  }
  0x14   :  { %191 = vsyncadd [#allocation3], 4294967280  ;;  %v197_v0 = vmov 0.0   ;;  %v119_v1 = vld [vmem:[#allocation2] sm:$0x1]  ;;  %s198_s22 = smov [#allocation5]  }
  0x15   :  { %36 = vst [vmem:[#allocation5] sm:$0x1] %v197_v0  ;;  %37 = vst [vmem:[#allocation6] sm:$0x1] %v197_v0  ;;  %v58_v3 = vmul.f32 %v119_v1, %v119_v1  ;;  %s94_s23 = sshll.u32 %s198_s22, 4  ;;  %s199_s24 = smov [#allocation6]   ;;  %s95_s23 = int_to_ptr.vmem [resolvable:$true] %s94_s23 }
  0x16   :  { %s104_s25 = sshll.u32 %s199_s24, 4  ;;  %s146_s0 = scalar_lea.vmem %s95_s23, 16  ;;  %s105_s25 = int_to_ptr.vmem [resolvable:$true] %s104_s25 }
  0x17   :  { %v67_v6 = vsub.f32 %v58_v3, %v58_v3  ;;  %p147_p8 = scmp.ne.s32.totalorder %s95_s23, %s146_s0  ;;  %s150_s26 = scalar_lea.vmem %s95_s23, 32 }
  0x18   :  { %p151_p9 = scmp.lt.s32.totalorder %s95_s23, %s95_s23  ;;  %p152_p10 = scmp.lt.s32.totalorder %s150_s26, %s146_s0 }
  0x1a   :  { %p153_p11 = por %p152_p10, %p151_p9 }
  0x1c   :  { %v74_v2 = vld [vmem:[#allocation5] sm:$0x1]  ;;  %v80_v5 = vld [vmem:[#allocation6] sm:$0x1]  ;;  %p154_p12 = pnand %p153_p11, %p147_p8 }
  0x1d   :  { %v75_v4 = vsub.f32 %v119_v1, %v74_v2  ;;  %v81_v9 = vadd.f32 %v80_v5, %v67_v6 }
  0x1f   :  { %v78_v7 = vadd.f32 %v75_v4, %v74_v2  ;;  %v82_v8 = vmul.f32 %v75_v4, %v75_v4 }
  0x21   :  { %79 = vst [vmem:[#allocation5] sm:$0x1] %v78_v7  ;;  %v85_v10 = vmul.f32 0.0, %v82_v8 }
  0x22   :  { %157 = shalt.err (!%p154_p12)
}
  0x23   :  { %s158_s29 = scalar_lea.hbm %s252_s1, 16 }
  0x24   :  { %p159_p13 = scmp.ne.s32.totalorder %s252_s1, %s158_s29  ;;  %p162_p0 = scmp.lt.u32.totalorder %s158_s29, %s252_s1 }
  0x26   :  { %p164_p1 = pnand %p162_p0, %p159_p13 }
  0x28   :  { %167 = shalt.err (!%p164_p1)
}
  0x29   :  { %97 = dma.vmem_to_hbm [thread:$0]  %s95_s23, 16, %s252_s1, [#allocation4]   ;;  %v86_v11 = vadd.f32 %v85_v10, %v81_v9 }
  0x2a   :  { %s168_s8 = scalar_lea.vmem %s105_s25, 16  ;;  %s172_s9 = scalar_lea.vmem %s105_s25, 32 }
  0x2b   :  { %87 = vst [vmem:[#allocation6] sm:$0x1] %v86_v11  ;;  %p169_p2 = scmp.ne.s32.totalorder %s105_s25, %s168_s8  ;;  %p173_p3 = scmp.lt.s32.totalorder %s105_s25, %s105_s25 }
  0x2c   :  { %p174_p4 = scmp.lt.s32.totalorder %s172_s9, %s168_s8 }
  0x2e   :  { %p175_p5 = por %p174_p4, %p173_p3 }
  0x30   :  { %p176_p6 = pnand %p175_p5, %p169_p2 }
  0x32   :  { %179 = shalt.err (!%p176_p6)
}
  0x33   :  { %s180_s12 = scalar_lea.hbm %s253_s2, 16 }
  0x34   :  { %p181_p7 = scmp.ne.s32.totalorder %s253_s2, %s180_s12  ;;  %p184_p8 = scmp.lt.u32.totalorder %s180_s12, %s253_s2 }
  0x36   :  { %p186_p9 = pnand %p184_p8, %p181_p7 }
  0x38   :  { %189 = shalt.err (!%p186_p9)
}
  0x39   :  { %107 = dma.vmem_to_hbm [thread:$0]  %s105_s25, 16, %s253_s2, [#allocation7]  }
  0x3a   :  { %192 = dma.done.wait [#allocation4], 16  }
  0x3b   :  { %193 = vsyncadd [#allocation4], 4294967280 }
  0x3c   :  { %194 = dma.done.wait [#allocation7], 16  }
  0x3d   :  { %195 = vsyncadd [#allocation7], 4294967280 }
  0x3e   :  { %114 = vsyncpa [#allocation3], 1 }
  0x3f   :  { %115 = vsyncpa [#allocation4], 1 }
  0x40   :  { %116 = vsyncpa [#allocation7], 1 }

</bundles_post_ra>
